<compile_context>
chip_gen: v5e
topology: v5e:2x2
jax: 0.10.0
libtpu: 0.0.40
codegen_flags: <defaults>
</compile_context>

<pallas_src>
import jax
import jax.numpy as jnp
from jax.experimental import pallas as pl
from jax.experimental.pallas import tpu as pltpu

EPS = 1e-5  # PyTorch nn.LayerNorm default


def _round_up(n, m):
    return (n + m - 1) // m * m


def _vmem_capacity_bytes():
    try:
        return int(pltpu.get_tpu_info().vmem_capacity_bytes)
    except Exception:
        return 64 << 20  # conservative (v7x per-core) fallback


def _layernorm(h, gamma, beta):
    # One-pass variance: var = E[h^2] - mu^2 (both reductions independent).
    mu = jnp.mean(h, axis=-1, keepdims=True)
    ms = jnp.mean(h * h, axis=-1, keepdims=True)
    var = jnp.maximum(ms - mu * mu, 0.0)
    return (h - mu) * (jax.lax.rsqrt(var + EPS) * gamma) + beta


def _epilogue(hs, w2_ref, vec_ref):
    """fc1/shortcut biases + ln1 + relu + fc2 + ln2 + ln_s + add + relu."""
    dout = w2_ref.shape[1]
    h = hs[:, :dout] + vec_ref[0:1, :]        # fc1 + b1
    s = hs[:, dout:] + vec_ref[6:7, :]        # fc_s + bs

    h = _layernorm(h, vec_ref[1:2, :], vec_ref[2:3, :])
    h = jnp.maximum(h, 0.0)
    # dropout: eval-mode identity.

    h = jnp.dot(h.astype(jnp.bfloat16), w2_ref[...],
                preferred_element_type=jnp.float32) + vec_ref[3:4, :]
    h = _layernorm(h, vec_ref[4:5, :], vec_ref[5:6, :])

    s = _layernorm(s, vec_ref[7:8, :], vec_ref[8:9, :])
    return jnp.maximum(h + s, 0.0)


def residual_block_kernel(x_ref, w1s_ref, w2_ref, vec_ref, o_ref):
    # vec_ref rows: 0=b1 1=g1 2=be1 3=b2 4=g2 5=be2 6=bs 7=gs 8=bes (9..15 pad)
    xb = x_ref[...].astype(jnp.bfloat16)      # in-kernel cast (VPU, hidden)
    # Fused fc1 + shortcut fc: one MXU pass over x, f32 accumulation.
    hs = jnp.dot(xb, w1s_ref[...], preferred_element_type=jnp.float32)
    o_ref[...] = _epilogue(hs, w2_ref, vec_ref).astype(o_ref.dtype)


def residual_block_kernel_ktiled(x_ref, w1s_ref, w2_ref, vec_ref, o_ref, acc_ref):
    # Large-Din fallback: stream the fused (Din, 2*Dout) weight over a K grid
    # axis with an f32 accumulator; epilogue only on the last K step.
    k = pl.program_id(1)

    @pl.when(k == 0)
    def _():
        acc_ref[...] = jnp.zeros_like(acc_ref)

    xb = x_ref[...].astype(jnp.bfloat16)
    acc_ref[...] += jnp.dot(xb, w1s_ref[...], preferred_element_type=jnp.float32)

    @pl.when(k == pl.num_programs(1) - 1)
    def _():
        o_ref[...] = _epilogue(acc_ref[...], w2_ref, vec_ref).astype(o_ref.dtype)


def pack_params(raw_params):
    """Pack raw (w1,b1,g1,be1,w2,b2,g2,be2,ws,bs,gs,bes) into kernel layout."""
    (w1, b1, g1, be1, w2, b2, g2, be2, ws, bs, gs, bes) = raw_params
    dout = w1.shape[1]
    assert dout % 128 == 0, "output_dim must be a multiple of 128 (lane-dense)"
    # Fused (Din, 2*Dout) weight for the two x-side matmuls, bf16 for the MXU.
    w1s = jnp.concatenate([w1, ws], axis=1).astype(jnp.bfloat16)
    w2b = w2.astype(jnp.bfloat16)
    # Pack the nine (1, Dout) vectors into one (16, Dout) f32 array (sublane pad).
    rows = jnp.concatenate(
        [r.reshape(1, dout) for r in (b1, g1, be1, b2, g2, be2, bs, gs, bes)],
        axis=0).astype(jnp.float32)
    vecs = jnp.zeros((16, dout), jnp.float32).at[:9, :].set(rows)
    return w1s, w2b, vecs


def residual_block(x, packed_params, *, out_dtype=jnp.bfloat16, tb=None,
                   force_ktiling=False):
    w1s, w2, vecs = packed_params
    B, Din = x.shape
    Dout = w2.shape[1]
    Din_p = _round_up(Din, 128)

    # Generation-aware budgets.
    vmem_cap = _vmem_capacity_bytes()
    two_core = vmem_cap <= (80 << 20)              # v7x-like: 64 MiB/TC, 2 TCs
    vmem_ceiling = (64 << 20) if two_core else (100 << 20)

    # Pad contraction dim to a multiple of 128 only when needed (zero rows/cols
    # contribute nothing to the matmul, so this is exact).
    if Din_p != Din:
        x = jnp.pad(x, ((0, 0), (0, Din_p - Din)))
    if w1s.shape[0] != Din_p:
        w1s = jnp.pad(w1s, ((0, Din_p - w1s.shape[0]), (0, 0)))

    # Batch tile: big enough to feed the MXU / amortize per-step overhead,
    # shrink (multiple of 8) for tiny demo batches; on v7x make sure there are
    # at least 2 batch tiles so both TensorCores get work.
    if tb is None:
        tb_cap = 256 if two_core else 512
        tb = min(tb_cap, _round_up(B, 8))
        if two_core and B >= 16:
            tb = min(tb, _round_up(-(-B // 2), 8))
    Bp = _round_up(B, tb)
    if Bp != B:
        x = jnp.pad(x, ((0, Bp - B), (0, 0)))

    x_itemsize = x.dtype.itemsize
    out_itemsize = jnp.dtype(out_dtype).itemsize
    weight_bytes = (w1s.size * w1s.dtype.itemsize
                    + w2.size * w2.dtype.itemsize
                    + vecs.size * vecs.dtype.itemsize)
    use_ktiling = force_ktiling or (weight_bytes > int(0.45 * vmem_ceiling))

    if not use_ktiling:
        # ---- resident-weight path (weights single-buffered in VMEM) ----
        x_bufs = 3 if (not two_core and Din_p >= 2048) else 2
        vmem_need = (weight_bytes
                     + x_bufs * tb * Din_p * x_itemsize
                     + 2 * tb * Dout * out_itemsize
                     + (8 << 20))
        vmem_limit = int(min(max(vmem_need, 32 << 20), vmem_ceiling))
        if x_bufs == 2:
            x_spec = pl.BlockSpec((tb, Din_p), lambda i: (i, 0))
        else:
            x_spec = pl.BlockSpec((tb, Din_p), lambda i: (i, 0),
                                  pipeline_mode=pl.Buffered(x_bufs))
        out = pl.pallas_call(
            residual_block_kernel,
            out_shape=jax.ShapeDtypeStruct((Bp, Dout), out_dtype),
            grid=(Bp // tb,),
            in_specs=[
                x_spec,                                           # x: batch-tiled
                pl.BlockSpec((Din_p, 2 * Dout), lambda i: (0, 0),
                             pipeline_mode=pl.Buffered(1)),       # fused fc1|fc_s W
                pl.BlockSpec((Dout, Dout), lambda i: (0, 0),
                             pipeline_mode=pl.Buffered(1)),       # fc2 W
                pl.BlockSpec((16, Dout), lambda i: (0, 0),
                             pipeline_mode=pl.Buffered(1)),       # packed vectors
            ],
            out_specs=pl.BlockSpec((tb, Dout), lambda i: (i, 0)),
            compiler_params=pltpu.CompilerParams(
                dimension_semantics=("parallel",),
                vmem_limit_bytes=vmem_limit,
            ),
        )(x, w1s, w2, vecs)
        return out[:B]

    # ---- K-tiled fallback (large Din/Dout: fused weight streamed over K) ----
    tk = 512 if Din_p % 512 == 0 else (256 if Din_p % 256 == 0 else 128)
    vmem_need = (2 * tk * 2 * Dout * w1s.dtype.itemsize      # streamed fused W (2 bufs)
                 + w2.size * w2.dtype.itemsize                # resident fc2 W
                 + vecs.size * vecs.dtype.itemsize
                 + 2 * tb * tk * x_itemsize                   # x tiles (2 bufs)
                 + tb * 2 * Dout * 4                          # f32 accumulator
                 + 2 * tb * Dout * out_itemsize
                 + (8 << 20))
    vmem_limit = int(min(max(vmem_need, 32 << 20), vmem_ceiling))
    out = pl.pallas_call(
        residual_block_kernel_ktiled,
        out_shape=jax.ShapeDtypeStruct((Bp, Dout), out_dtype),
        grid=(Bp // tb, Din_p // tk),
        in_specs=[
            pl.BlockSpec((tb, tk), lambda i, k: (i, k)),          # x
            pl.BlockSpec((tk, 2 * Dout), lambda i, k: (k, 0)),    # fused W, K-streamed
            pl.BlockSpec((Dout, Dout), lambda i, k: (0, 0),
                         pipeline_mode=pl.Buffered(1)),           # fc2 W (resident)
            pl.BlockSpec((16, Dout), lambda i, k: (0, 0),
                         pipeline_mode=pl.Buffered(1)),           # packed vectors
        ],
        out_specs=pl.BlockSpec((tb, Dout), lambda i, k: (i, 0)),
        scratch_shapes=[pltpu.VMEM((tb, 2 * Dout), jnp.float32)],
        compiler_params=pltpu.CompilerParams(
            dimension_semantics=("parallel", "arbitrary"),
            vmem_limit_bytes=vmem_limit,
        ),
    )(x, w1s, w2, vecs)
    return out[:B]


def init_params(key, input_dim, output_dim):
    ks = jax.random.split(key, 6)
    # fc1: Linear(input_dim, output_dim) — stored as (in, out)
    w1 = jax.random.normal(ks[0], (input_dim, output_dim), jnp.float32) * 0.05
    b1 = jax.random.normal(ks[1], (1, output_dim), jnp.float32) * 0.01
    g1 = jnp.ones((1, output_dim), jnp.float32)
    be1 = jnp.zeros((1, output_dim), jnp.float32)
    # fc2: Linear(output_dim, output_dim)
    w2 = jax.random.normal(ks[2], (output_dim, output_dim), jnp.float32) * 0.05
    b2 = jax.random.normal(ks[3], (1, output_dim), jnp.float32) * 0.01
    g2 = jnp.ones((1, output_dim), jnp.float32)
    be2 = jnp.zeros((1, output_dim), jnp.float32)
    # shortcut: Linear(input_dim, output_dim) + LayerNorm(output_dim)
    ws = jax.random.normal(ks[4], (input_dim, output_dim), jnp.float32) * 0.05
    bs = jax.random.normal(ks[5], (1, output_dim), jnp.float32) * 0.01
    gs = jnp.ones((1, output_dim), jnp.float32)
    bes = jnp.zeros((1, output_dim), jnp.float32)
    return (w1, b1, g1, be1, w2, b2, g2, be2, ws, bs, gs, bes)


def residual_block_ref(x, raw_params):
    """Pure-JAX reference.  Mirrors the kernel's bf16 matmul operands but uses
    the classic two-pass LayerNorm, so it cross-checks the one-pass LN."""
    (w1, b1, g1, be1, w2, b2, g2, be2, ws, bs, gs, bes) = raw_params

    def ln(h, g, b):
        mu = jnp.mean(h, axis=-1, keepdims=True)
        var = jnp.mean(jnp.square(h - mu), axis=-1, keepdims=True)
        return (h - mu) * jax.lax.rsqrt(var + EPS) * g + b

    xb = x.astype(jnp.bfloat16)
    h = jnp.dot(xb, w1.astype(jnp.bfloat16), preferred_element_type=jnp.float32) + b1
    h = jnp.maximum(ln(h, g1, be1), 0.0)
    h = jnp.dot(h.astype(jnp.bfloat16), w2.astype(jnp.bfloat16),
                preferred_element_type=jnp.float32) + b2
    h = ln(h, g2, be2)
    s = jnp.dot(xb, ws.astype(jnp.bfloat16), preferred_element_type=jnp.float32) + bs
    s = ln(s, gs, bes)
    return jnp.maximum(h + s, 0.0)


if __name__ == "__main__":
    batch, input_dim, output_dim = 8, 96, 128   # input_dim != output_dim -> shortcut path

    key = jax.random.PRNGKey(0)
    kx, kp = jax.random.split(key)
    x = jax.random.normal(kx, (batch, input_dim), jnp.float32)
    raw_params = init_params(kp, input_dim, output_dim)
    packed = pack_params(raw_params)

    ref = residual_block_ref(x, raw_params)

    # Main (resident-weight) path.
    out = jax.block_until_ready(residual_block(x, packed))
    assert out.shape == (batch, output_dim)
    err = float(jnp.max(jnp.abs(out.astype(jnp.float32) - ref)))
    assert jnp.allclose(out.astype(jnp.float32), ref, atol=3e-2, rtol=3e-2), err

    # Large-model fallback path (K-tiled fc1/shortcut) — exercised at small shape.
    out_kt = jax.block_until_ready(residual_block(x, packed, force_ktiling=True))
    err_kt = float(jnp.max(jnp.abs(out_kt.astype(jnp.float32) - ref)))
    assert jnp.allclose(out_kt.astype(jnp.float32), ref, atol=3e-2, rtol=3e-2), err_kt

    print("KERNEL_OK")
</pallas_src>

<mosaic_0001>
module attributes {stable_mosaic.version = 11 : i64} {
  func.func @residual_block_kernel(%arg0: i32, %arg1: memref<8x128xf32, #tpu.memory_space<vmem>>, %arg2: memref<128x256xbf16, #tpu.memory_space<vmem>>, %arg3: memref<128x128xbf16, #tpu.memory_space<vmem>>, %arg4: memref<16x128xf32, #tpu.memory_space<vmem>>, %arg5: memref<8x128xbf16, #tpu.memory_space<vmem>>) attributes {dimension_semantics = [#tpu.dimension_semantics<parallel>], iteration_bounds = array<i64: 1>, scalar_prefetch = 0 : i64, scratch_operands = 0 : i64, tpu.core_type = #tpu.core_type<tc>, window_params = [{transform_indices = @transform_0, window_bounds = array<i64: 8, 128>}, {pipeline_mode = #tpu.pipeline_mode<synchronous>, transform_indices = @transform_1, window_bounds = array<i64: 128, 256>}, {pipeline_mode = #tpu.pipeline_mode<synchronous>, transform_indices = @transform_2, window_bounds = array<i64: 128, 128>}, {pipeline_mode = #tpu.pipeline_mode<synchronous>, transform_indices = @transform_3, window_bounds = array<i64: 16, 128>}, {transform_indices = @transform_4, window_bounds = array<i64: 8, 128>}]} {
    %c0 = arith.constant 0 : index
    %c0_0 = arith.constant 0 : index
    %0 = vector.load %arg1[%c0, %c0_0] : memref<8x128xf32, #tpu.memory_space<vmem>>, vector<8x128xf32>
    %1 = arith.truncf %0 : vector<8x128xf32> to vector<8x128xbf16>
    %c0_1 = arith.constant 0 : index
    %c0_2 = arith.constant 0 : index
    %2 = vector.load %arg2[%c0_1, %c0_2] : memref<128x256xbf16, #tpu.memory_space<vmem>>, vector<128x256xbf16>
    %cst = arith.constant dense<0.000000e+00> : vector<8x256xf32>
    %3 = tpu.matmul %1, %2, %cst {dimension_numbers = #tpu.dot_dimension_numbers<[1], [0], [0], [1], [0, 0, 1, 1], [], []>} : vector<8x128xbf16>, vector<128x256xbf16>, vector<8x256xf32> -> vector<8x256xf32>
    %4 = vector.extract_strided_slice %3 {offsets = [0, 0], sizes = [8, 128], strides = [1, 1]} : vector<8x256xf32> to vector<8x128xf32>
    %c0_3 = arith.constant 0 : index
    %c0_4 = arith.constant 0 : index
    %5 = vector.load %arg4[%c0_3, %c0_4] : memref<16x128xf32, #tpu.memory_space<vmem>>, vector<1x128xf32>
    %6 = vector.broadcast %5 : vector<1x128xf32> to vector<8x128xf32>
    %7 = arith.addf %4, %6 : vector<8x128xf32>
    %8 = vector.extract_strided_slice %3 {offsets = [0, 128], sizes = [8, 128], strides = [1, 1]} : vector<8x256xf32> to vector<8x128xf32>
    %c6 = arith.constant 6 : index
    %c0_5 = arith.constant 0 : index
    %9 = vector.load %arg4[%c6, %c0_5] : memref<16x128xf32, #tpu.memory_space<vmem>>, vector<1x128xf32>
    %10 = vector.broadcast %9 : vector<1x128xf32> to vector<8x128xf32>
    %11 = arith.addf %8, %10 : vector<8x128xf32>
    %c1 = arith.constant 1 : index
    %c0_6 = arith.constant 0 : index
    %12 = vector.load %arg4[%c1, %c0_6] : memref<16x128xf32, #tpu.memory_space<vmem>>, vector<1x128xf32>
    %c2 = arith.constant 2 : index
    %c0_7 = arith.constant 0 : index
    %13 = vector.load %arg4[%c2, %c0_7] : memref<16x128xf32, #tpu.memory_space<vmem>>, vector<1x128xf32>
    %cst_8 = arith.constant dense<0.000000e+00> : vector<8xf32>
    %14 = vector.multi_reduction <add>, %7, %cst_8 [1] : vector<8x128xf32> to vector<8xf32>
    %15 = vector.shape_cast %14 : vector<8xf32> to vector<8x1xf32>
    %cst_9 = arith.constant 1.280000e+02 : f32
    %16 = vector.broadcast %cst_9 : f32 to vector<8x1xf32>
    %17 = arith.divf %15, %16 : vector<8x1xf32>
    %18 = arith.mulf %7, %7 : vector<8x128xf32>
    %cst_10 = arith.constant dense<0.000000e+00> : vector<8xf32>
    %19 = vector.multi_reduction <add>, %18, %cst_10 [1] : vector<8x128xf32> to vector<8xf32>
    %20 = vector.shape_cast %19 : vector<8xf32> to vector<8x1xf32>
    %cst_11 = arith.constant 1.280000e+02 : f32
    %21 = vector.broadcast %cst_11 : f32 to vector<8x1xf32>
    %22 = arith.divf %20, %21 : vector<8x1xf32>
    %23 = arith.mulf %17, %17 : vector<8x1xf32>
    %24 = arith.subf %22, %23 : vector<8x1xf32>
    %cst_12 = arith.constant 0.000000e+00 : f32
    %25 = vector.broadcast %cst_12 : f32 to vector<8x1xf32>
    %26 = arith.maximumf %24, %25 : vector<8x1xf32>
    %27 = vector.broadcast %17 : vector<8x1xf32> to vector<8x128xf32>
    %28 = arith.subf %7, %27 : vector<8x128xf32>
    %cst_13 = arith.constant 9.99999974E-6 : f32
    %29 = vector.broadcast %cst_13 : f32 to vector<8x1xf32>
    %30 = arith.addf %26, %29 : vector<8x1xf32>
    %31 = math.rsqrt %30 : vector<8x1xf32>
    %32 = vector.broadcast %31 : vector<8x1xf32> to vector<8x128xf32>
    %33 = vector.broadcast %12 : vector<1x128xf32> to vector<8x128xf32>
    %34 = arith.mulf %32, %33 : vector<8x128xf32>
    %35 = arith.mulf %28, %34 : vector<8x128xf32>
    %36 = vector.broadcast %13 : vector<1x128xf32> to vector<8x128xf32>
    %37 = arith.addf %35, %36 : vector<8x128xf32>
    %cst_14 = arith.constant 0.000000e+00 : f32
    %38 = vector.broadcast %cst_14 : f32 to vector<8x128xf32>
    %39 = arith.maximumf %37, %38 : vector<8x128xf32>
    %40 = arith.truncf %39 : vector<8x128xf32> to vector<8x128xbf16>
    %c0_15 = arith.constant 0 : index
    %c0_16 = arith.constant 0 : index
    %41 = vector.load %arg3[%c0_15, %c0_16] : memref<128x128xbf16, #tpu.memory_space<vmem>>, vector<128x128xbf16>
    %cst_17 = arith.constant dense<0.000000e+00> : vector<8x128xf32>
    %42 = tpu.matmul %40, %41, %cst_17 {dimension_numbers = #tpu.dot_dimension_numbers<[1], [0], [0], [1], [0, 0, 1, 1], [], []>} : vector<8x128xbf16>, vector<128x128xbf16>, vector<8x128xf32> -> vector<8x128xf32>
    %c3 = arith.constant 3 : index
    %c0_18 = arith.constant 0 : index
    %43 = vector.load %arg4[%c3, %c0_18] : memref<16x128xf32, #tpu.memory_space<vmem>>, vector<1x128xf32>
    %44 = vector.broadcast %43 : vector<1x128xf32> to vector<8x128xf32>
    %45 = arith.addf %42, %44 : vector<8x128xf32>
    %c4 = arith.constant 4 : index
    %c0_19 = arith.constant 0 : index
    %46 = vector.load %arg4[%c4, %c0_19] : memref<16x128xf32, #tpu.memory_space<vmem>>, vector<1x128xf32>
    %c5 = arith.constant 5 : index
    %c0_20 = arith.constant 0 : index
    %47 = vector.load %arg4[%c5, %c0_20] : memref<16x128xf32, #tpu.memory_space<vmem>>, vector<1x128xf32>
    %cst_21 = arith.constant dense<0.000000e+00> : vector<8xf32>
    %48 = vector.multi_reduction <add>, %45, %cst_21 [1] : vector<8x128xf32> to vector<8xf32>
    %49 = vector.shape_cast %48 : vector<8xf32> to vector<8x1xf32>
    %cst_22 = arith.constant 1.280000e+02 : f32
    %50 = vector.broadcast %cst_22 : f32 to vector<8x1xf32>
    %51 = arith.divf %49, %50 : vector<8x1xf32>
    %52 = arith.mulf %45, %45 : vector<8x128xf32>
    %cst_23 = arith.constant dense<0.000000e+00> : vector<8xf32>
    %53 = vector.multi_reduction <add>, %52, %cst_23 [1] : vector<8x128xf32> to vector<8xf32>
    %54 = vector.shape_cast %53 : vector<8xf32> to vector<8x1xf32>
    %cst_24 = arith.constant 1.280000e+02 : f32
    %55 = vector.broadcast %cst_24 : f32 to vector<8x1xf32>
    %56 = arith.divf %54, %55 : vector<8x1xf32>
    %57 = arith.mulf %51, %51 : vector<8x1xf32>
    %58 = arith.subf %56, %57 : vector<8x1xf32>
    %cst_25 = arith.constant 0.000000e+00 : f32
    %59 = vector.broadcast %cst_25 : f32 to vector<8x1xf32>
    %60 = arith.maximumf %58, %59 : vector<8x1xf32>
    %61 = vector.broadcast %51 : vector<8x1xf32> to vector<8x128xf32>
    %62 = arith.subf %45, %61 : vector<8x128xf32>
    %cst_26 = arith.constant 9.99999974E-6 : f32
    %63 = vector.broadcast %cst_26 : f32 to vector<8x1xf32>
    %64 = arith.addf %60, %63 : vector<8x1xf32>
    %65 = math.rsqrt %64 : vector<8x1xf32>
    %66 = vector.broadcast %65 : vector<8x1xf32> to vector<8x128xf32>
    %67 = vector.broadcast %46 : vector<1x128xf32> to vector<8x128xf32>
    %68 = arith.mulf %66, %67 : vector<8x128xf32>
    %69 = arith.mulf %62, %68 : vector<8x128xf32>
    %70 = vector.broadcast %47 : vector<1x128xf32> to vector<8x128xf32>
    %71 = arith.addf %69, %70 : vector<8x128xf32>
    %c7 = arith.constant 7 : index
    %c0_27 = arith.constant 0 : index
    %72 = vector.load %arg4[%c7, %c0_27] : memref<16x128xf32, #tpu.memory_space<vmem>>, vector<1x128xf32>
    %c8 = arith.constant 8 : index
    %c0_28 = arith.constant 0 : index
    %73 = vector.load %arg4[%c8, %c0_28] : memref<16x128xf32, #tpu.memory_space<vmem>>, vector<1x128xf32>
    %cst_29 = arith.constant dense<0.000000e+00> : vector<8xf32>
    %74 = vector.multi_reduction <add>, %11, %cst_29 [1] : vector<8x128xf32> to vector<8xf32>
    %75 = vector.shape_cast %74 : vector<8xf32> to vector<8x1xf32>
    %cst_30 = arith.constant 1.280000e+02 : f32
    %76 = vector.broadcast %cst_30 : f32 to vector<8x1xf32>
    %77 = arith.divf %75, %76 : vector<8x1xf32>
    %78 = arith.mulf %11, %11 : vector<8x128xf32>
    %cst_31 = arith.constant dense<0.000000e+00> : vector<8xf32>
    %79 = vector.multi_reduction <add>, %78, %cst_31 [1] : vector<8x128xf32> to vector<8xf32>
    %80 = vector.shape_cast %79 : vector<8xf32> to vector<8x1xf32>
    %cst_32 = arith.constant 1.280000e+02 : f32
    %81 = vector.broadcast %cst_32 : f32 to vector<8x1xf32>
    %82 = arith.divf %80, %81 : vector<8x1xf32>
    %83 = arith.mulf %77, %77 : vector<8x1xf32>
    %84 = arith.subf %82, %83 : vector<8x1xf32>
    %cst_33 = arith.constant 0.000000e+00 : f32
    %85 = vector.broadcast %cst_33 : f32 to vector<8x1xf32>
    %86 = arith.maximumf %84, %85 : vector<8x1xf32>
    %87 = vector.broadcast %77 : vector<8x1xf32> to vector<8x128xf32>
    %88 = arith.subf %11, %87 : vector<8x128xf32>
    %cst_34 = arith.constant 9.99999974E-6 : f32
    %89 = vector.broadcast %cst_34 : f32 to vector<8x1xf32>
    %90 = arith.addf %86, %89 : vector<8x1xf32>
    %91 = math.rsqrt %90 : vector<8x1xf32>
    %92 = vector.broadcast %91 : vector<8x1xf32> to vector<8x128xf32>
    %93 = vector.broadcast %72 : vector<1x128xf32> to vector<8x128xf32>
    %94 = arith.mulf %92, %93 : vector<8x128xf32>
    %95 = arith.mulf %88, %94 : vector<8x128xf32>
    %96 = vector.broadcast %73 : vector<1x128xf32> to vector<8x128xf32>
    %97 = arith.addf %95, %96 : vector<8x128xf32>
    %98 = arith.addf %71, %97 : vector<8x128xf32>
    %cst_35 = arith.constant 0.000000e+00 : f32
    %99 = vector.broadcast %cst_35 : f32 to vector<8x128xf32>
    %100 = arith.maximumf %98, %99 : vector<8x128xf32>
    %101 = arith.truncf %100 : vector<8x128xf32> to vector<8x128xbf16>
    %c0_36 = arith.constant 0 : index
    %c0_37 = arith.constant 0 : index
    %102 = vector.load %arg5[%c0_36, %c0_37] : memref<8x128xbf16, #tpu.memory_space<vmem>>, vector<8x128xbf16>
    tpu.vector_store %arg5[%c0_36, %c0_37], %101 {strides = array<i32>} : memref<8x128xbf16, #tpu.memory_space<vmem>>, vector<8x128xbf16>,
    return
  }
  func.func @transform_0(%arg0: i32) -> (i32, i32) {
    %c0_i32 = arith.constant 0 : i32
    %c0_i32_0 = arith.constant 0 : i32
    return %arg0, %c0_i32 : i32, i32
  }
  func.func @transform_1(%arg0: i32) -> (i32, i32) {
    %c0_i32 = arith.constant 0 : i32
    %c0_i32_0 = arith.constant 0 : i32
    %c0_i32_1 = arith.constant 0 : i32
    return %c0_i32, %c0_i32_0 : i32, i32
  }
  func.func @transform_2(%arg0: i32) -> (i32, i32) {
    %c0_i32 = arith.constant 0 : i32
    %c0_i32_0 = arith.constant 0 : i32
    %c0_i32_1 = arith.constant 0 : i32
    return %c0_i32, %c0_i32_0 : i32, i32
  }
  func.func @transform_3(%arg0: i32) -> (i32, i32) {
    %c0_i32 = arith.constant 0 : i32
    %c0_i32_0 = arith.constant 0 : i32
    %c0_i32_1 = arith.constant 0 : i32
    return %c0_i32, %c0_i32_0 : i32, i32
  }
  func.func @transform_4(%arg0: i32) -> (i32, i32) {
    %c0_i32 = arith.constant 0 : i32
    %c0_i32_0 = arith.constant 0 : i32
    return %arg0, %c0_i32 : i32, i32
  }
}

</mosaic_0001>

<bundles_post_ra>
// kernel: tpu_custom_call.1
= control target key start
LH: loop header
LB: loop body
LE: loop exit
PB: predicated region body
PF: predicated region fallthrough
CT: control target
= control target key end

     0   :  { %9 = vsyncpa [#allocation3], 0  ;;  %s750_s0 = inlined_call_operand.hbm [shape: f32[8,128], index: 0, kind: input, shape index: {}]   ;;  %s751_s1 = inlined_call_operand.hbm [shape: bf16[128,256], index: 1, kind: input, shape index: {}]   ;;  %s752_s2 = inlined_call_operand.hbm [shape: bf16[128,128], index: 2, kind: input, shape index: {}]   ;;  %s753_s3 = inlined_call_operand.hbm [shape: f32[16,128], index: 3, kind: input, shape index: {}]   ;;  %s754_s4 = inlined_call_operand.hbm [shape: bf16[8,128], index: 4, kind: output, shape index: {}]  }
   0x1   :  { %10 = vsyncpa [#allocation6], 0 }
   0x2   :  { %11 = vsyncpa [#allocation9], 0  ;;  %s28_s17 = sshll.u32 %s751_s1, 4  ;;  %s29_s17 = int_to_ptr.hbm [resolvable:$true] %s28_s17 }
   0x3   :  { %12 = vsyncpa [#allocation4], 0  ;;  %s682_s18 = smov [#allocation5]   ;;  %s18_s22 = sshll.u32 %s750_s0, 4  ;;  %s19_s22 = int_to_ptr.hbm [resolvable:$true] %s18_s22 }
   0x4   :  { %s30_s19 = sshll.u32 %s682_s18, 4  ;;  %s683_s23 = smov 128   ;;  %s31_s19 = int_to_ptr.vmem [resolvable:$true] %s30_s19 }
   0x5   :  { %s684_s24 = smov 8   ;;  %s685_s25 = smov [#allocation2]  }
   0x6   :  { %36 = dma.hbm_to_vmem [thread:$0]  %s29_s17, 2048, %s31_s19, [#allocation6], %s683_s23, %s683_s23, %s684_s24  }
   0x7   :  { %s20_s26 = sshll.u32 %s685_s25, 4  ;;  %s41_s29 = sshll.u32 %s752_s2, 4  ;;  %s21_s26 = int_to_ptr.vmem [resolvable:$true] %s20_s26  ;;  %s42_s29 = int_to_ptr.hbm [resolvable:$true] %s41_s29 }
   0x8   :  { %23 = dma.hbm_to_vmem [thread:$0]  %s19_s22, 128, %s21_s26, [#allocation3]  }
   0x9   :  { %s686_s1 = smov [#allocation7]   ;;  %s54_s0 = sshll.u32 %s753_s3, 4  ;;  %s55_s0 = int_to_ptr.hbm [resolvable:$true] %s54_s0 }
   0xa   :  { %s43_s30 = sshll.u32 %s686_s1, 4  ;;  %s687_s7 = smov 64   ;;  %s44_s30 = int_to_ptr.vmem [resolvable:$true] %s43_s30 }
   0xb   :  { %s688_s8 = smov 4   ;;  %s689_s9 = smov [#allocation8]  }
   0xc   :  { %49 = dma.hbm_to_vmem [thread:$0]  %s42_s29, 1024, %s44_s30, [#allocation6], %s687_s7, %s687_s7, %s688_s8  }
   0xd   :  { %s56_s10 = sshll.u32 %s689_s9, 4  ;;  %s57_s10 = int_to_ptr.vmem [resolvable:$true] %s56_s10 }
   0xe   :  { %62 = dma.hbm_to_vmem [thread:$0]  %s55_s0, 256, %s57_s10, [#allocation9], %s683_s23, %s683_s23, %s684_s24  }
   0xf   :  { %674 = dma.done.wait [#allocation3], 128  }
  0x10   :  { %675 = vsyncadd [#allocation3], 4294967168 }
  0x11   :  { %676 = dma.done.wait [#allocation6], 3072  }
  0x12   :  { %677 = vsyncadd [#allocation6], 4294964224 }
  0x13   :  { %678 = dma.done.wait [#allocation9], 256  }
  0x14   :  { %679 = vsyncadd [#allocation9], 4294967040  ;;  %v465_v0 = vld [vmem:[#allocation5 + $0x70] sm:$0xf]  ;;  %v518_v1 = vld [vmem:[#allocation5 + $0x74] sm:$0xf0] }
  0x15   :  { %v457_v2 = vld [vmem:[#allocation5 + $0x60] sm:$0xf]  ;;  %v466_v3 = vor.u32 %v518_v1, %v465_v0  ;;  %v516_v4 = vld [vmem:[#allocation5 + $0x64] sm:$0xf0]  ;;  %v449_v6 = vld [vmem:[#allocation5 + $0x50] sm:$0xf] }
  0x16   :  { %v458_v5 = vor.u32 %v516_v4, %v457_v2  ;;  %v514_v7 = vld [vmem:[#allocation5 + $0x54] sm:$0xf0]  ;;  %v441_v8 = vld [vmem:[#allocation5 + $0x40] sm:$0xf]  ;;  %v512_v10 = vld [vmem:[#allocation5 + $0x44] sm:$0xf0] }
  0x17   :  { %177 = vmatpush.bf16.msra.mxu0 %v466_v3  ;;  %v450_v9 = vor.u32 %v514_v7, %v449_v6  ;;  %v442_v11 = vor.u32 %v512_v10, %v441_v8  ;;  %v433_v12 = vld [vmem:[#allocation5 + $0x30] sm:$0xf]  ;;  %v510_v13 = vld [vmem:[#allocation5 + $0x34] sm:$0xf0]  ;;  %v425_v15 = vld [vmem:[#allocation5 + $0x20] sm:$0xf] }
  0x18   :  { %v434_v14 = vor.u32 %v510_v13, %v433_v12  ;;  %v508_v16 = vld [vmem:[#allocation5 + $0x24] sm:$0xf0]  ;;  %v417_v18 = vld [vmem:[#allocation5 + $0x10] sm:$0xf]  ;;  %v506_v19 = vld [vmem:[#allocation5 + $0x14] sm:$0xf0] }
  0x19   :  { %v426_v17 = vor.u32 %v508_v16, %v425_v15  ;;  %v418_v20 = vor.u32 %v506_v19, %v417_v18  ;;  %v409_v21 = vld [vmem:[#allocation5] sm:$0xf]  ;;  %v504_v22 = vld [vmem:[#allocation5 + $0x4] sm:$0xf0]  ;;  %v79_v24 = vld [vmem:[#allocation2] sm:$0xff]  ;;  %v690_v31 = vmov 128.0  }
  0x1a   :  { %v410_v23 = vor.u32 %v504_v22, %v409_v21  ;;  %v729_v25 = vpack.c.bf16 %v79_v24, %v79_v24  ;;  %v537_v26 = vld [vmem:[#allocation8] ss:$0 sm:$0xff]  ;;  %546 = vrcp.f32 %v690_v31  ;;  %v526_v32 = vld [vmem:[#allocation7 + $0x38] sm:$0xff]  ;;  %v525_v34 = vld [vmem:[#allocation7 + $0x30] sm:$0xff]  ;;  %s691_s2 = smov [#allocation10]   ;;  %s395_s13 = sshll.u32 %s754_s4, 4  ;;  %s396_s13 = int_to_ptr.hbm [resolvable:$true] %s395_s13 }
  0x1b   :  { %178 = vmatpush.bf16.msra.mxu0 %v458_v5  ;;  %313 = vmatpush.bf16.msra.mxu2 %v526_v32  ;;  %v517_v35 = vld [vmem:[#allocation5 + $0x74] sm:$0xf]  ;;  %v467_v36 = vld [vmem:[#allocation5 + $0x78] sm:$0xf0]  ;;  %v524_v39 = vld [vmem:[#allocation7 + $0x28] sm:$0xff]  ;;  %s393_s3 = sshll.u32 %s691_s2, 4  ;;  %s394_s3 = int_to_ptr.vmem [resolvable:$true] %s393_s3 }
  0x1c   :  { %v470_v38 = vor.u32 %v517_v35, %v467_v36  ;;  %v515_v40 = vld [vmem:[#allocation5 + $0x64] sm:$0xf]  ;;  %v459_v41 = vld [vmem:[#allocation5 + $0x68] sm:$0xf0]  ;;  %v513_v45 = vld [vmem:[#allocation5 + $0x54] sm:$0xf] }
  0x1d   :  { %v462_v43 = vor.u32 %v515_v40, %v459_v41  ;;  %v523_v44 = vld [vmem:[#allocation7 + $0x20] sm:$0xff]  ;;  %v451_v46 = vld [vmem:[#allocation5 + $0x58] sm:$0xf0]  ;;  %v443_v51 = vld [vmem:[#allocation5 + $0x48] sm:$0xf0] }
  0x1e   :  { %190 = vmatpush.bf16.msra.mxu1 %v470_v38  ;;  %v454_v48 = vor.u32 %v513_v45, %v451_v46  ;;  %v522_v49 = vld [vmem:[#allocation7 + $0x18] sm:$0xff]  ;;  %v511_v50 = vld [vmem:[#allocation5 + $0x44] sm:$0xf]  ;;  %v521_v54 = vld [vmem:[#allocation7 + $0x10] sm:$0xff] }
  0x1f   :  { %179 = vmatpush.bf16.msra.mxu0 %v450_v9  ;;  %314 = vmatpush.bf16.msra.mxu2 %v525_v34  ;;  %v446_v53 = vor.u32 %v511_v50, %v443_v51  ;;  %v509_v55 = vld [vmem:[#allocation5 + $0x34] sm:$0xf]  ;;  %v435_v56 = vld [vmem:[#allocation5 + $0x38] sm:$0xf0]  ;;  %v507_v59 = vld [vmem:[#allocation5 + $0x24] sm:$0xf] }
  0x20   :  { %v547_v33 = vpop.eup %546  ;;  %v438_v58 = vor.u32 %v509_v55, %v435_v56  ;;  %v427_v60 = vld [vmem:[#allocation5 + $0x28] sm:$0xf0]  ;;  %v505_v1 = vld [vmem:[#allocation5 + $0x14] sm:$0xf]  ;;  %v419_v2 = vld [vmem:[#allocation5 + $0x18] sm:$0xf0] }
  0x21   :  { %v214_v37 = vmul.f32 128.0, %v547_v33  ;;  %vm218_vm0 = vweird.f32 %v547_v33  ;;  %v520_v62 = vld [vmem:[#allocation7 + $0x8] sm:$0xff]  ;;  %v430_v63 = vor.u32 %v507_v59, %v427_v60  ;;  %v519_v3 = vld [vmem:[#allocation7] sm:$0xff]  ;;  %v422_v5 = vor.u32 %v505_v1, %v419_v2 }
  0x22   :  { %191 = vmatpush.bf16.msra.mxu1 %v462_v43  ;;  %v503_v10 = vld [vmem:[#allocation5 + $0x4] sm:$0xf]  ;;  %v538_v19 = vld [vmem:[#allocation8 + $0x1] ss:$0 sm:$0xff]  ;;  %v539_v24 = vld [vmem:[#allocation8 + $0x2] ss:$0 sm:$0xff] }
  0x23   :  { %180 = vmatpush.bf16.msra.mxu0 %v442_v11  ;;  %v215_v42 = vsub.f32 1.0, %v214_v37  ;;  %315 = vmatpush.bf16.msra.mxu2 %v524_v39  ;;  %v411_v11 = vld [vmem:[#allocation5 + $0x8] sm:$0xf0]  ;;  %v541_v32 = vld [vmem:[#allocation8 + $0x3] ss:$0 sm:$0xff] }
  0x24   :  { %v414_v12 = vor.u32 %v503_v10, %v411_v11  ;;  %v540_v34 = vld [vmem:[#allocation8 + $0x6] ss:$0 sm:$0xff]  ;;  %v542_v1 = vld [vmem:[#allocation8 + $0x4] ss:$0 sm:$0xff] }
  0x25   :  { %v216_v47 = vmul.f32 %v547_v33, %v215_v42 }
  0x26   :  { %192 = vmatpush.bf16.msra.mxu1 %v454_v48 }
  0x27   :  { %181 = vmatpush.bf16.msra.mxu0 %v434_v14  ;;  %316 = vmatpush.bf16.msra.mxu2 %v523_v44  ;;  %v217_v52 = vadd.f32 %v547_v33, %v216_v47 }
  0x29   :  { %v737_v61 = vsel %vm218_vm0, %v547_v33, %v217_v52 }
  0x2a   :  { %193 = vmatpush.bf16.msra.mxu1 %v446_v53 }
  0x2b   :  { %182 = vmatpush.bf16.msra.mxu0 %v426_v17  ;;  %317 = vmatpush.bf16.msra.mxu2 %v522_v49 }
  0x2e   :  { %194 = vmatpush.bf16.msra.mxu1 %v438_v58 }
  0x2f   :  { %183 = vmatpush.bf16.msra.mxu0 %v418_v20  ;;  %318 = vmatpush.bf16.msra.mxu2 %v521_v54 }
  0x32   :  { %195 = vmatpush.bf16.msra.mxu1 %v430_v63 }
  0x33   :  { %184 = vmatpush.bf16.msra.mxu0 %v410_v23  ;;  %319 = vmatpush.bf16.msra.mxu2 %v520_v62 }
  0x36   :  { %185 = vmatmul.bf16.vlgmr.msra.gmra.mxu0 %v729_v25  ;;  %196 = vmatpush.bf16.msra.mxu1 %v422_v5  ;;  %v543_v5 = vld [vmem:[#allocation8 + $0x7] ss:$0 sm:$0xff] }
  0x37   :  { %320 = vmatpush.bf16.msra.mxu2 %v519_v3 }
  0x3a   :  { %197 = vmatpush.bf16.msra.mxu1 %v414_v12  ;;  %v544_v12 = vld [vmem:[#allocation8 + $0x5] ss:$0 sm:$0xff] }
  0x3d   :  { %198 = vmatmul.bf16.vlgmr.msra.gmra.mxu1 %v729_v25 }
  0xb3   :  { %v186_v27 = vpop.f32.mrf.mxu0 }
  0xb4   :  { %v732_v28 = vadd.f32 %v537_v26, %v186_v27 }
  0xb6   :  { %211 = vadd.xlane.f32.xlu0 %v732_v28  ;;  %v221_v30 = vmul.f32 %v732_v28, %v732_v28 }
  0xba   :  { %v199_v25 = vpop.f32.mrf.mxu1 }
  0xbb   :  { %v188_v29 = vpop.f32.mrf.mxu0  ;;  %v208_v37 = vadd.f32 %v540_v34, %v199_v25 }
  0xbd   :  { %v360_v39 = vmul.f32 %v208_v37, %v208_v37 }
  0xbe   :  { %222 = vadd.xlane.f32.xlu0 %v221_v30 }
  0xc2   :  { %v201_v31 = vpop.f32.mrf.mxu1 }
 0x129   :  { %v212_v57 = vpop.xlane.xlu0 %211 }
 0x12a   :  { %v220_v0 = vmul.f32 %v737_v61, %v212_v57 }
 0x12c   :  { %v225_v6 = vmul.f32 %v220_v0, %v220_v0  ;;  %v228_v22 = vsub.f32 %v732_v28, %v220_v0 }
 0x131   :  { %v223_v4 = vpop.xlane.xlu0 %222 }
 0x132   :  { %v224_v7 = vmul.f32 %v223_v4, %v737_v61 }
 0x134   :  { %v226_v8 = vsub.f32 %v224_v7, %v225_v6 }
 0x136   :  { %v227_v9 = vmax.f32 %v226_v8, 0.0 }
 0x138   :  { %v229_v13 = vadd.f32 1e-05, %v227_v9 }
 0x13a   :  { %548 = vrsqrt.f32 %v229_v13  ;;  %vm236_vm2 = vweird.f32 %v229_v13 }
 0x140   :  { %v549_v14 = vpop.eup %548 }
 0x141   :  { %v231_v15 = vmul.f32 %v549_v14, %v229_v13  ;;  %vm237_vm1 = vweird.f32 %v549_v14  ;;  %v545_v13 = vld [vmem:[#allocation8 + $0x8] ss:$0 sm:$0xff] }
 0x142   :  { %vm238_vm3 = vmor %vm236_vm2, %vm237_vm1 }
 0x143   :  { %v232_v16 = vmul.f32 %v549_v14, %v231_v15 }
 0x145   :  { %v233_v17 = vmul.f32 0.5, %v232_v16 }
 0x147   :  { %v234_v18 = vsub.f32 1.5, %v233_v17 }
 0x149   :  { %v235_v20 = vmul.f32 %v549_v14, %v234_v18 }
 0x14b   :  { %v239_v21 = vsel %vm238_vm3, %v549_v14, %v235_v20 }
 0x14c   :  { %v241_v23 = vmul.f32 %v538_v19, %v239_v21 }
 0x14e   :  { %v242_v26 = vmul.f32 %v241_v23, %v228_v22 }
 0x150   :  { %v244_v27 = vadd.f32 %v539_v24, %v242_v26 }
 0x152   :  { %v245_v29 = vmax.f32 %v244_v27, 0.0 }
 0x154   :  { %v246_v30 = vpack.c.bf16 %v245_v29, %v245_v29 }
 0x156   :  { %321 = vmatmul.bf16.vlgmr.msra.gmra.mxu2 %v246_v30 }
 0x1d9   :  { %v322_v33 = vpop.f32.mrf.mxu2 }
 0x1da   :  { %v323_v35 = vadd.f32 %v541_v32, %v322_v33 }
 0x1dc   :  { %328 = vadd.xlane.f32.xlu1 %v323_v35  ;;  %v331_v36 = vmul.f32 %v323_v35, %v323_v35 }
 0x1de   :  { %332 = vadd.xlane.f32.xlu2 %v331_v36 }
 0x1e1   :  { %v324_v38 = vpop.f32.mrf.mxu2 }
 0x1e4   :  { %357 = vadd.xlane.f32.xlu1 %v208_v37 }
 0x1e6   :  { %361 = vadd.xlane.f32.xlu2 %v360_v39 }
 0x24f   :  { %v329_v28 = vpop.xlane.xlu1 %328 }
 0x250   :  { %v330_v40 = vmul.f32 %v329_v28, %v737_v61 }
 0x251   :  { %v333_v41 = vpop.xlane.xlu2 %332 }
 0x252   :  { %v335_v42 = vmul.f32 %v330_v40, %v330_v40  ;;  %v334_v43 = vmul.f32 %v333_v41, %v737_v61  ;;  %v338_v7 = vsub.f32 %v323_v35, %v330_v40 }
 0x254   :  { %v336_v44 = vsub.f32 %v334_v43, %v335_v42 }
 0x256   :  { %v337_v45 = vmax.f32 %v336_v44, 0.0 }
 0x257   :  { %v358_v46 = vpop.xlane.xlu1 %357 }
 0x258   :  { %v339_v47 = vadd.f32 1e-05, %v337_v45  ;;  %v359_v48 = vmul.f32 %v358_v46, %v737_v61 }
 0x259   :  { %v362_v49 = vpop.xlane.xlu2 %361 }
 0x25a   :  { %550 = vrsqrt.f32 %v339_v47  ;;  %v364_v50 = vmul.f32 %v359_v48, %v359_v48  ;;  %v363_v51 = vmul.f32 %v362_v49, %v737_v61  ;;  %vm346_vm5 = vweird.f32 %v339_v47 }
 0x25b   :  { %v367_v9 = vsub.f32 %v208_v37, %v359_v48 }
 0x25c   :  { %v365_v52 = vsub.f32 %v363_v51, %v364_v50 }
 0x25e   :  { %v366_v53 = vmax.f32 %v365_v52, 0.0 }
 0x260   :  { %v551_v54 = vpop.eup %550  ;;  %v368_v56 = vadd.f32 1e-05, %v366_v53 }
 0x261   :  { %v341_v55 = vmul.f32 %v551_v54, %v339_v47  ;;  %vm347_vm4 = vweird.f32 %v551_v54 }
 0x262   :  { %552 = vrsqrt.f32 %v368_v56  ;;  %vm348_vm6 = vmor %vm346_vm5, %vm347_vm4  ;;  %vm375_vm8 = vweird.f32 %v368_v56 }
 0x263   :  { %v342_v57 = vmul.f32 %v551_v54, %v341_v55 }
 0x265   :  { %v343_v58 = vmul.f32 0.5, %v342_v57 }
 0x267   :  { %v344_v59 = vsub.f32 1.5, %v343_v58 }
 0x268   :  { %v553_v60 = vpop.eup %552 }
 0x269   :  { %v345_v62 = vmul.f32 %v551_v54, %v344_v59  ;;  %v370_v63 = vmul.f32 %v553_v60, %v368_v56  ;;  %vm376_vm7 = vweird.f32 %v553_v60 }
 0x26a   :  { %vm377_vm9 = vmor %vm375_vm8, %vm376_vm7 }
 0x26b   :  { %v371_v0 = vmul.f32 %v553_v60, %v370_v63  ;;  %v349_v2 = vsel %vm348_vm6, %v551_v54, %v345_v62 }
 0x26c   :  { %v351_v4 = vmul.f32 %v542_v1, %v349_v2 }
 0x26d   :  { %v372_v3 = vmul.f32 0.5, %v371_v0 }
 0x26e   :  { %v352_v11 = vmul.f32 %v351_v4, %v338_v7 }
 0x26f   :  { %v373_v61 = vsub.f32 1.5, %v372_v3 }
 0x270   :  { %v354_v15 = vadd.f32 %v544_v12, %v352_v11 }
 0x271   :  { %v374_v6 = vmul.f32 %v553_v60, %v373_v61 }
 0x273   :  { %v378_v8 = vsel %vm377_vm9, %v553_v60, %v374_v6 }
 0x274   :  { %v380_v10 = vmul.f32 %v543_v5, %v378_v8 }
 0x276   :  { %v381_v14 = vmul.f32 %v380_v10, %v367_v9 }
 0x278   :  { %v383_v16 = vadd.f32 %v545_v13, %v381_v14 }
 0x27a   :  { %v384_v17 = vadd.f32 %v383_v16, %v354_v15 }
 0x27c   :  { %v385_v18 = vmax.f32 %v384_v17, 0.0 }
 0x27e   :  { %v386_v19 = vpack.c.bf16 %v385_v18, %v385_v18 }
 0x280   :  { %387 = vst [vmem:[#allocation10] sm:$0xf] %v386_v19 }
 0x281   :  { %398 = dma.vmem_to_hbm [thread:$0]  %s394_s3, 64, %s396_s13, [#allocation4]  }
 0x282   :  { %680 = dma.done.wait [#allocation4], 64  }
 0x283   :  { %681 = vsyncadd [#allocation4], 4294967232 }
 0x284   :  { %403 = vsyncpa [#allocation3], 1 }
 0x285   :  { %404 = vsyncpa [#allocation6], 1 }
 0x286   :  { %405 = vsyncpa [#allocation9], 1 }
 0x287   :  { %406 = vsyncpa [#allocation4], 1 }

</bundles_post_ra>
